<compile_context>
chip_gen: v5e
topology: v5e:2x2
jax: 0.10.0
libtpu: 0.0.40
codegen_flags: <defaults>
</compile_context>

<pallas_src>
import functools

import jax
import jax.numpy as jnp
from jax.experimental import pallas as pl
from jax.experimental.pallas import tpu as pltpu


def _round_up(x: int, m: int) -> int:
    return (x + m - 1) // m * m


def _termination_mlp_kernel(z_ref, w1_ref, b1_ref, w2t_ref, b2_ref, out_ref, *,
                            apply_sigmoid: bool, compute_dtype, row_chunk: int):
    """One batch tile: logits/probs for the rows of z, stored lane-dense.

    z_ref   : (TB, D)  batch tile of Z_core (rows on sublanes, D on lanes)
    w1_ref  : (D, H)   first Linear weight (transposed vs. torch), compute_dtype
    b1_ref  : (1, H)   first Linear bias, f32
    w2t_ref : (1, H)   second Linear weight as a row vector (W2^T), f32
    b2_ref  : (1, 1)   second Linear bias, scalar in SMEM
    out_ref : (1, TB)  lane-dense logits / probabilities
    """
    w1 = w1_ref[...]
    b1 = b1_ref[...]
    w2t = w2t_ref[...]
    b2 = b2_ref[0, 0]

    tb = z_ref.shape[0]
    n_chunks = tb // row_chunk        # wrapper guarantees row_chunk | TB

    # Row-chunked body: keeps the (chunk, H) activation `h` in vregs instead of
    # materializing a full (TB, H) f32 tensor that round-trips through VMEM
    # (matters most on v5e's single vst slot once TB >= ~512).  Static Python
    # loop -> fully unrolled straight-line code with static ref slices; each
    # chunk's intermediates die at its store, so live ranges stay short.
    for c in range(n_chunks):
        r0 = c * row_chunk
        z_c = z_ref[pl.ds(r0, row_chunk), :].astype(compute_dtype)

        # Linear(D -> H) on the MXU (native bf16 rate when compute_dtype=bf16),
        # f32 accumulation; bias add + ReLU on the VPU in f32.
        h = jnp.dot(z_c, w1, preferred_element_type=jnp.float32) + b1
        h = jnp.maximum(h, 0.0)

        # Dropout(p=0.0) == identity in forward/eval -> omitted.

        # Linear(H -> 1) written as (1,H) x (chunk,H) contracting on H so the
        # result is already (1, chunk): lane-dense, unmasked stores.
        # TODO(synk): if this dot_general forces an XLU relayout of h, the
        # fully transposed dataflow (z delivered as (D, B)) avoids it -- only
        # worth it when the producer can emit z transposed.
        logit = jax.lax.dot_general(
            w2t, h,
            dimension_numbers=(((1,), (1,)), ((), ())),
            preferred_element_type=jnp.float32) + b2

        val = jax.nn.sigmoid(logit) if apply_sigmoid else logit
        out_ref[:, pl.ds(r0, row_chunk)] = val.astype(out_ref.dtype)


def termination_prediction_forward(z_core, w1, b1, w2, b2,
                                    return_logit: bool = False,
                                    *,
                                    block_b: int = 2048,
                                    row_chunk: int = 256,
                                    compute_dtype=jnp.bfloat16):
    """Pallas forward pass.

    z_core: (B, D); w1: (D, H); b1: (H,); w2: (H, 1); b2: (1,).
    Returns a (B,) f32 vector of logits (return_logit=True) or probabilities.

    compute_dtype=bf16 runs the D->H matmul at native MXU rate (f32 matmul on
    TPU is a 3-6x multi-pass); pass jnp.float32 for strict-f32 operands.
    Passing z_core already in bf16 additionally halves its HBM traffic.
    """
    B, D = z_core.shape
    H = w1.shape[1]

    # --- batch tile selection ------------------------------------------------
    b_pad128 = _round_up(B, 128)
    blk = min(_round_up(block_b, 128), b_pad128)
    # v7x has 2 TensorCores: prefer >= 2 parallel grid steps when the batch
    # allows it (costs only one extra ~0.35us step on single-TC v5e/v6e).
    if b_pad128 >= 256 and pl.cdiv(b_pad128, blk) < 2:
        blk = _round_up(b_pad128 // 2, 128)
    block_b = blk

    row_chunk = min(row_chunk, block_b)
    if block_b % row_chunk:
        row_chunk = 128                      # 128 always divides block_b

    # No wrapper-side padding of z: Pallas masks the edge z tile.  The output
    # is over-allocated to grid*block_b columns so all stores are full tiles
    # (unmasked); the pad columns are sliced off below.
    grid_n = pl.cdiv(B, block_b)
    out_cols = grid_n * block_b

    # --- parameter prep (tiny, one-off) ---------------------------------------
    w1_c = w1.astype(compute_dtype)                       # (D, H)
    b1_2d = b1.reshape(1, H).astype(jnp.float32)          # (1, H)
    w2_t = w2.reshape(1, H).astype(jnp.float32)           # (1, H) == W2^T
    b2_2d = b2.reshape(1, 1).astype(jnp.float32)          # (1, 1) scalar

    kernel = functools.partial(_termination_mlp_kernel,
                               apply_sigmoid=not return_logit,
                               compute_dtype=compute_dtype,
                               row_chunk=row_chunk)

    # Scoped-VMEM insurance for very large tiles (v5e default is only 16 MiB).
    z_tile_bytes = block_b * D * z_core.dtype.itemsize
    vmem_est = 2 * (z_tile_bytes + block_b * 4) + D * H * 4 + 4 * H * 4 + (64 << 10)
    vmem_limit = None if vmem_est < (8 << 20) else min(2 * vmem_est, 64 << 20)

    out = pl.pallas_call(
        kernel,
        out_shape=jax.ShapeDtypeStruct((1, out_cols), jnp.float32),
        grid=(grid_n,),
        in_specs=[
            pl.BlockSpec((block_b, D), lambda i: (i, 0)),        # Z tile
            pl.BlockSpec((D, H), lambda i: (0, 0)),              # W1 (VMEM-resident)
            pl.BlockSpec((1, H), lambda i: (0, 0)),              # b1
            pl.BlockSpec((1, H), lambda i: (0, 0)),              # W2^T
            pl.BlockSpec(memory_space=pltpu.MemorySpace.SMEM),   # b2 scalar
        ],
        out_specs=pl.BlockSpec((1, block_b), lambda i: (0, i)),
        compiler_params=pltpu.CompilerParams(
            dimension_semantics=("parallel",),
            vmem_limit_bytes=vmem_limit),
    )(z_core, w1_c, b1_2d, w2_t, b2_2d)

    # squeeze(-1) + drop grid padding: plain-JAX glue.
    return out[0, :B]


def reference_forward(z_core, w1, b1, w2, b2, return_logit=False):
    h = jnp.maximum(z_core @ w1 + b1, 0.0)
    logit = (h @ w2 + b2)[:, 0]
    return logit if return_logit else jax.nn.sigmoid(logit)


if __name__ == "__main__":
    # Shapes consistent with the module: core_graph_vector_dim=32, hidden_dim=128.
    D, H = 32, 128

    key = jax.random.PRNGKey(0)
    k_z, k_w1, k_b1, k_w2, k_b2, k_z2 = jax.random.split(key, 6)

    # Deterministic synthetic parameters (roughly torch-like uniform scale).
    lim1 = 1.0 / jnp.sqrt(D)
    lim2 = 1.0 / jnp.sqrt(H)
    w1 = jax.random.uniform(k_w1, (D, H), jnp.float32, -lim1, lim1)
    b1 = jax.random.uniform(k_b1, (H,),   jnp.float32, -lim1, lim1)
    w2 = jax.random.uniform(k_w2, (H, 1), jnp.float32, -lim2, lim2)
    b2 = jax.random.uniform(k_b2, (1,),   jnp.float32, -lim2, lim2)

    # --- Case 1: tiny batch (B=16), strict-f32 operands, both output modes. ---
    B = 16
    z = jax.random.normal(k_z, (B, D), dtype=jnp.float32)

    prob = jax.block_until_ready(
        termination_prediction_forward(z, w1, b1, w2, b2, False,
                                       compute_dtype=jnp.float32))
    logit = jax.block_until_ready(
        termination_prediction_forward(z, w1, b1, w2, b2, True,
                                       compute_dtype=jnp.float32))

    prob_ref = reference_forward(z, w1, b1, w2, b2, False)
    logit_ref = reference_forward(z, w1, b1, w2, b2, True)

    assert prob.shape == (B,) and logit.shape == (B,)
    assert jnp.allclose(prob, prob_ref, atol=1e-5, rtol=1e-5)
    assert jnp.allclose(logit, logit_ref, atol=1e-5, rtol=1e-5)

    # --- Case 2: non-multiple batch (B=300) -> 2 parallel grid steps, masked
    # edge z tile, default bf16 MXU fast path (loose tolerance vs f32 ref). ---
    B2 = 300
    z2 = jax.random.normal(k_z2, (B2, D), dtype=jnp.float32)

    prob2 = jax.block_until_ready(
        termination_prediction_forward(z2, w1, b1, w2, b2, False))
    prob2_ref = reference_forward(z2, w1, b1, w2, b2, False)
    assert prob2.shape == (B2,)
    assert jnp.allclose(prob2, prob2_ref, atol=5e-2, rtol=5e-2)

    # f32 path on the multi-step grid for exactness of the edge-tile handling.
    logit2 = jax.block_until_ready(
        termination_prediction_forward(z2, w1, b1, w2, b2, True,
                                       compute_dtype=jnp.float32))
    logit2_ref = reference_forward(z2, w1, b1, w2, b2, True)
    assert jnp.allclose(logit2, logit2_ref, atol=1e-5, rtol=1e-5)

    print("KERNEL_OK")
</pallas_src>

<mosaic_0001>
module attributes {stable_mosaic.version = 11 : i64} {
  func.func @_termination_mlp_kernel(%arg0: i32, %arg1: memref<128x32xf32, #tpu.memory_space<vmem>>, %arg2: memref<32x128xf32, #tpu.memory_space<vmem>>, %arg3: memref<1x128xf32, #tpu.memory_space<vmem>>, %arg4: memref<1x128xf32, #tpu.memory_space<vmem>>, %arg5: memref<1x1xf32, #tpu.memory_space<smem>>, %arg6: memref<1x128xf32, #tpu.memory_space<vmem>>) attributes {dimension_semantics = [#tpu.dimension_semantics<parallel>], iteration_bounds = array<i64: 1>, scalar_prefetch = 0 : i64, scratch_operands = 0 : i64, tpu.core_type = #tpu.core_type<tc>, window_params = [{transform_indices = @transform_0, window_bounds = array<i64: 128, 32>}, {pipeline_mode = #tpu.pipeline_mode<synchronous>, transform_indices = @transform_1, window_bounds = array<i64: 32, 128>}, {pipeline_mode = #tpu.pipeline_mode<synchronous>, transform_indices = @transform_2, window_bounds = array<i64: 1, 128>}, {pipeline_mode = #tpu.pipeline_mode<synchronous>, transform_indices = @transform_3, window_bounds = array<i64: 1, 128>}, {transform_indices = @transform_4, window_bounds = array<i64: 1, 1>}, {transform_indices = @transform_5, window_bounds = array<i64: 1, 128>}]} {
    %c0 = arith.constant 0 : index
    %c0_0 = arith.constant 0 : index
    %0 = vector.load %arg2[%c0, %c0_0] : memref<32x128xf32, #tpu.memory_space<vmem>>, vector<32x128xf32>
    %c0_1 = arith.constant 0 : index
    %c0_2 = arith.constant 0 : index
    %1 = vector.load %arg3[%c0_1, %c0_2] : memref<1x128xf32, #tpu.memory_space<vmem>>, vector<1x128xf32>
    %c0_3 = arith.constant 0 : index
    %c0_4 = arith.constant 0 : index
    %2 = vector.load %arg4[%c0_3, %c0_4] : memref<1x128xf32, #tpu.memory_space<vmem>>, vector<1x128xf32>
    %c0_5 = arith.constant 0 : index
    %c0_6 = arith.constant 0 : index
    %3 = memref.load %arg5[%c0_5, %c0_6] : memref<1x1xf32, #tpu.memory_space<smem>>
    %c0_7 = arith.constant 0 : index
    %c0_8 = arith.constant 0 : index
    %4 = vector.load %arg1[%c0_7, %c0_8] : memref<128x32xf32, #tpu.memory_space<vmem>>, vector<128x32xf32>
    %cst = arith.constant dense<0.000000e+00> : vector<128x128xf32>
    %5 = tpu.matmul %4, %0, %cst {dimension_numbers = #tpu.dot_dimension_numbers<[1], [0], [0], [1], [0, 0, 1, 1], [], []>} : vector<128x32xf32>, vector<32x128xf32>, vector<128x128xf32> -> vector<128x128xf32>
    %6 = vector.broadcast %1 : vector<1x128xf32> to vector<128x128xf32>
    %7 = arith.addf %5, %6 : vector<128x128xf32>
    %cst_9 = arith.constant 0.000000e+00 : f32
    %8 = vector.broadcast %cst_9 : f32 to vector<128x128xf32>
    %9 = arith.maximumf %7, %8 : vector<128x128xf32>
    %cst_10 = arith.constant dense<0.000000e+00> : vector<1x128xf32>
    %10 = tpu.matmul %2, %9, %cst_10 {dimension_numbers = #tpu.dot_dimension_numbers<[1], [1], [0], [0], [0, 0, 1, 0], [], []>} : vector<1x128xf32>, vector<128x128xf32>, vector<1x128xf32> -> vector<1x128xf32>
    %11 = vector.broadcast %3 : f32 to vector<1x128xf32>
    %12 = arith.addf %10, %11 : vector<1x128xf32>
    %13 = arith.negf %12 : vector<1x128xf32>
    %14 = math.exp %13 : vector<1x128xf32>
    %cst_11 = arith.constant 1.000000e+00 : f32
    %15 = vector.broadcast %cst_11 : f32 to vector<1x128xf32>
    %16 = arith.addf %15, %14 : vector<1x128xf32>
    %17 = arith.divf %15, %16 : vector<1x128xf32>
    %c0_12 = arith.constant 0 : index
    %c0_13 = arith.constant 0 : index
    %18 = vector.load %arg6[%c0_12, %c0_13] : memref<1x128xf32, #tpu.memory_space<vmem>>, vector<1x128xf32>
    tpu.vector_store %arg6[%c0_12, %c0_13], %17 {strides = array<i32>} : memref<1x128xf32, #tpu.memory_space<vmem>>, vector<1x128xf32>,
    return
  }
  func.func @transform_0(%arg0: i32) -> (i32, i32) {
    %c0_i32 = arith.constant 0 : i32
    %c0_i32_0 = arith.constant 0 : i32
    return %arg0, %c0_i32 : i32, i32
  }
  func.func @transform_1(%arg0: i32) -> (i32, i32) {
    %c0_i32 = arith.constant 0 : i32
    %c0_i32_0 = arith.constant 0 : i32
    %c0_i32_1 = arith.constant 0 : i32
    return %c0_i32, %c0_i32_0 : i32, i32
  }
  func.func @transform_2(%arg0: i32) -> (i32, i32) {
    %c0_i32 = arith.constant 0 : i32
    %c0_i32_0 = arith.constant 0 : i32
    %c0_i32_1 = arith.constant 0 : i32
    return %c0_i32, %c0_i32_0 : i32, i32
  }
  func.func @transform_3(%arg0: i32) -> (i32, i32) {
    %c0_i32 = arith.constant 0 : i32
    %c0_i32_0 = arith.constant 0 : i32
    %c0_i32_1 = arith.constant 0 : i32
    return %c0_i32, %c0_i32_0 : i32, i32
  }
  func.func @transform_4(%arg0: i32) -> (i32, i32) {
    %c0_i32 = arith.constant 0 : i32
    %c0_i32_0 = arith.constant 0 : i32
    %c0_i32_1 = arith.constant 0 : i32
    return %c0_i32, %c0_i32_0 : i32, i32
  }
  func.func @transform_5(%arg0: i32) -> (i32, i32) {
    %c0_i32 = arith.constant 0 : i32
    %c0_i32_0 = arith.constant 0 : i32
    return %c0_i32, %arg0 : i32, i32
  }
}

</mosaic_0001>

<bundles_post_ra>
// kernel: tpu_custom_call.1
= control target key start
LH: loop header
LB: loop body
LE: loop exit
PB: predicated region body
PF: predicated region fallthrough
CT: control target
= control target key end

     0   :  { %11 = vsyncpa [#allocation4], 0  ;;  %s451_s0 = inlined_call_operand.hbm [shape: f32[16,32], index: 0, kind: input, shape index: {}]   ;;  %s452_s1 = inlined_call_operand.hbm [shape: f32[32,128], index: 1, kind: input, shape index: {}]   ;;  %s453_s2 = inlined_call_operand.vmem [shape: f32[1,128], index: 2, kind: input, shape index: {}]   ;;  %s454_s3 = inlined_call_operand.vmem [shape: f32[1,128], index: 3, kind: input, shape index: {}]   ;;  %s455_s4 = inlined_call_operand.<no memory space> [shape: f32[1,1], index: 4, kind: input, shape index: {}]   ;;  %s456_s5 = inlined_call_operand.hbm [shape: f32[1,128], index: 5, kind: output, shape index: {}]  }
   0x1   :  { %12 = vsyncpa [#allocation7], 0 }
   0x2   :  { %13 = vsyncpa [#allocation5], 0 }
   0x3   :  { %17 = vsyncadd [#allocation4], 1792  ;;  %s18_s20 = sshll.u32 %s451_s0, 4  ;;  %s382_s21 = smov [#allocation3]   ;;  %s19_s20 = int_to_ptr.hbm [resolvable:$true] %s18_s20 }
   0x4   :  { %s20_s22 = sshll.u32 %s382_s21, 4  ;;  %s31_s25 = sshll.u32 %s452_s1, 4  ;;  %s21_s22 = int_to_ptr.vmem [resolvable:$true] %s20_s22  ;;  %s32_s25 = int_to_ptr.hbm [resolvable:$true] %s31_s25 }
   0x5   :  { %s383_s26 = smov 128   ;;  %s384_s27 = smov 8  }
   0x6   :  { %26 = dma.hbm_to_vmem [thread:$0]  %s19_s20, 256, %s21_s22, [#allocation4], %s383_s26, %s383_s26, %s384_s27  }
   0x7   :  { %s385_s28 = smov [#allocation6]  }
   0x8   :  { %s33_s29 = sshll.u32 %s385_s28, 4  ;;  %s34_s29 = int_to_ptr.vmem [resolvable:$true] %s33_s29 }
   0x9   :  { %39 = dma.hbm_to_vmem [thread:$0]  %s32_s25, 512, %s34_s29, [#allocation7], %s383_s26, %s383_s26, %s384_s27  }
   0xa   :  { %376 = dma.done.wait [#allocation4], 2048  }
   0xb   :  { %377 = vsyncadd [#allocation4], 4294965248 }
   0xc   :  { %378 = dma.done.wait [#allocation7], 512  }
   0xd   :  { %379 = vsyncadd [#allocation7], 4294966784  ;;  %v57_v0 = vld [vmem:[#allocation6 + $0x18] sm:$0xff]  ;;  %v56_v1 = vld [vmem:[#allocation6 + $0x10] sm:$0xff]  ;;  %vm80_vm0 = vcmask 261120  }
   0xe   :  { %286 = vmatpush.msra.mxu2 %v57_v0  ;;  %287 = vmatpush.msra.mxu3 %v57_v0  ;;  %v55_v2 = vld [vmem:[#allocation6 + $0x8] sm:$0xff]  ;;  %v54_v3 = vld [vmem:[#allocation6] sm:$0xff]  ;;  %v67_v4 = vld [vmem:[#allocation3 + $0x30] sm:$0xff] }
   0xf   :  { %141 = vmatpush.msra.mxu0 %v57_v0  ;;  %v73_v5 = vld [vmem:[#allocation3 + $0x60] sm:$0xff]  ;;  %v68_v7 = vld [vmem:[#allocation3 + $0x38] sm:$0xff]  ;;  %v74_v8 = vld [vmem:[#allocation3 + $0x68] sm:$0xff] }
  0x10   :  { %288 = vmatpush.msra.mxu2 %v56_v1  ;;  %289 = vmatpush.msra.mxu3 %v56_v1  ;;  %v61_v6 = vld [vmem:[#allocation3] sm:$0xff]  ;;  %v62_v9 = vld [vmem:[#allocation3 + $0x8] sm:$0xff]  ;;  %v75_v11 = vld [vmem:[#allocation3 + $0x70] sm:$0xff] }
  0x11   :  { %142 = vmatpush.msra.mxu0 %v56_v1  ;;  %v69_v10 = vld [vmem:[#allocation3 + $0x40] sm:$0xff]  ;;  %v63_v12 = vld [vmem:[#allocation3 + $0x10] sm:$0xff]  ;;  %v70_v13 = vld [vmem:[#allocation3 + $0x48] sm:$0xff] }
  0x12   :  { %290 = vmatpush.msra.mxu2 %v55_v2  ;;  %291 = vmatpush.msra.mxu3 %v55_v2  ;;  %v76_v14 = vld [vmem:[#allocation3 + $0x78] sm:$0xff]  ;;  %v71_v16 = vld [vmem:[#allocation3 + $0x50] sm:$0xff]  ;;  %v65_v17 = vld [vmem:[#allocation3 + $0x20] sm:$0xff] }
  0x13   :  { %143 = vmatpush.msra.mxu0 %v55_v2  ;;  %v64_v15 = vld [vmem:[#allocation3 + $0x18] sm:$0xff]  ;;  %v66_v19 = vld [vmem:[#allocation3 + $0x28] sm:$0xff]  ;;  %v299_v28 = vld [vmem:[%s453_s2] ss:$0 sm:$0xff] }
  0x14   :  { %292 = vmatpush.msra.mxu2 %v54_v3  ;;  %293 = vmatpush.msra.mxu3 %v54_v3  ;;  %v72_v18 = vld [vmem:[#allocation3 + $0x58] sm:$0xff] }
  0x15   :  { %275 = vmatmul.msk.f32.vlgmr.msra.gmra.mxu2 %vm80_vm0, %v67_v4  ;;  %281 = vmatmul.msk.f32.vlgmr.msra.gmra.mxu3 %vm80_vm0, %v73_v5  ;;  %v59_v5 = vld [vmem:[%s454_s3] sm:$0x1]  ;;  %s386_s3 = smov [#allocation8]  }
  0x16   :  { %144 = vmatpush.msra.mxu0 %v54_v3  ;;  %s256_s8 = sshll.u32 %s386_s3, 4  ;;  %s257_s8 = int_to_ptr.vmem [resolvable:$true] %s256_s8 }
  0x17   :  { %269 = vmatmul.msk.f32.vlgmr.msra.gmra.mxu0 %vm80_vm0, %v61_v6  ;;  %v210_v6 = vstv %s455_s4  ;;  %s258_s4 = sshll.u32 %s456_s5, 4  ;;  %s259_s4 = int_to_ptr.hbm [resolvable:$true] %s258_s4 }
  0x1d   :  { %276 = vmatmul.msk.f32.gmra.mxu2 %vm80_vm0, %v68_v7  ;;  %282 = vmatmul.msk.f32.gmra.mxu3 %vm80_vm0, %v74_v8 }
  0x1f   :  { %270 = vmatmul.msk.f32.gmra.mxu0 %vm80_vm0, %v62_v9 }
  0x25   :  { %277 = vmatmul.msk.f32.gmra.mxu2 %vm80_vm0, %v69_v10  ;;  %283 = vmatmul.msk.f32.gmra.mxu3 %vm80_vm0, %v75_v11 }
  0x27   :  { %271 = vmatmul.msk.f32.gmra.mxu0 %vm80_vm0, %v63_v12 }
  0x2d   :  { %278 = vmatmul.msk.f32.gmra.mxu2 %vm80_vm0, %v70_v13  ;;  %284 = vmatmul.msk.f32.gmra.mxu3 %vm80_vm0, %v76_v14 }
  0x2f   :  { %272 = vmatmul.msk.f32.gmra.mxu0 %vm80_vm0, %v64_v15 }
  0x35   :  { %279 = vmatmul.msk.f32.gmra.mxu2 %vm80_vm0, %v71_v16 }
  0x37   :  { %273 = vmatmul.msk.f32.gmra.mxu0 %vm80_vm0, %v65_v17 }
  0x3d   :  { %280 = vmatmul.msk.f32.gmra.mxu2 %vm80_vm0, %v72_v18 }
  0x3f   :  { %274 = vmatmul.msk.f32.gmra.mxu0 %vm80_vm0, %v66_v19 }
  0x94   :  { %v146_v22 = vpop.f32.mrf.mxu0 }
  0x95   :  { %v147_v2 = vadd.f32 %v299_v28, %v146_v22 }
  0x97   :  { %v194_v4 = vmax.f32 %v147_v2, 0.0 }
  0x98   :  { %v164_v20 = vpop.f32.mrf.mxu2  ;;  %v182_v21 = vpop.f32.mrf.mxu3 }
  0x99   :  { %v183_v38 = vadd.f32 %v299_v28, %v182_v21  ;;  %v165_v54 = vadd.f32 %v299_v28, %v164_v20 }
  0x9b   :  { %v206_v41 = vmax.f32 %v183_v38, 0.0  ;;  %v200_v57 = vmax.f32 %v165_v54, 0.0 }
  0x9c   :  { %v149_v27 = vpop.f32.mrf.mxu0 }
  0x9d   :  { %v150_v0 = vadd.f32 %v299_v28, %v149_v27 }
  0x9f   :  { %v195_v3 = vmax.f32 %v150_v0, 0.0 }
  0xa0   :  { %v167_v23 = vpop.f32.mrf.mxu2  ;;  %v185_v24 = vpop.f32.mrf.mxu3 }
  0xa1   :  { %v186_v35 = vadd.f32 %v299_v28, %v185_v24  ;;  %v168_v51 = vadd.f32 %v299_v28, %v167_v23 }
  0xa3   :  { %v207_v39 = vmax.f32 %v186_v35, 0.0  ;;  %v201_v55 = vmax.f32 %v168_v51, 0.0 }
  0xa4   :  { %v152_v34 = vpop.f32.mrf.mxu0 }
  0xa5   :  { %v153_v62 = vadd.f32 %v299_v28, %v152_v34 }
  0xa7   :  { %v196_v1 = vmax.f32 %v153_v62, 0.0 }
  0xa8   :  { %v170_v25 = vpop.f32.mrf.mxu2  ;;  %v188_v26 = vpop.f32.mrf.mxu3 }
  0xa9   :  { %v189_v32 = vadd.f32 %v299_v28, %v188_v26  ;;  %v171_v49 = vadd.f32 %v299_v28, %v170_v25 }
  0xab   :  { %v208_v36 = vmax.f32 %v189_v32, 0.0  ;;  %v202_v52 = vmax.f32 %v171_v49, 0.0 }
  0xac   :  { %v155_v40 = vpop.f32.mrf.mxu0 }
  0xad   :  { %v156_v60 = vadd.f32 %v299_v28, %v155_v40 }
  0xaf   :  { %v197_v63 = vmax.f32 %v156_v60, 0.0 }
  0xb0   :  { %v173_v29 = vpop.f32.mrf.mxu2  ;;  %v191_v30 = vpop.f32.mrf.mxu3 }
  0xb1   :  { %v192_v31 = vadd.f32 %v299_v28, %v191_v30  ;;  %v174_v46 = vadd.f32 %v299_v28, %v173_v29 }
  0xb3   :  { %v209_v33 = vmax.f32 %v192_v31, 0.0  ;;  %v203_v50 = vmax.f32 %v174_v46, 0.0 }
  0xb4   :  { %v158_v48 = vpop.f32.mrf.mxu0 }
  0xb5   :  { %211 = vmatpush.xpose.msra.mxu1 %v209_v33  ;;  %v159_v59 = vadd.f32 %v299_v28, %v158_v48 }
  0xb7   :  { %v198_v61 = vmax.f32 %v159_v59, 0.0 }
  0xb8   :  { %v176_v37 = vpop.f32.mrf.mxu2 }
  0xb9   :  { %212 = vmatpush.xpose.msra.mxu1 %v208_v36  ;;  %v177_v44 = vadd.f32 %v299_v28, %v176_v37 }
  0xbb   :  { %v204_v47 = vmax.f32 %v177_v44, 0.0 }
  0xbc   :  { %v161_v53 = vpop.f32.mrf.mxu0 }
  0xbd   :  { %213 = vmatpush.xpose.msra.mxu1 %v207_v39  ;;  %v162_v56 = vadd.f32 %v299_v28, %v161_v53 }
  0xbf   :  { %v199_v58 = vmax.f32 %v162_v56, 0.0 }
  0xc0   :  { %v179_v42 = vpop.f32.mrf.mxu2 }
  0xc1   :  { %v180_v43 = vadd.f32 %v299_v28, %v179_v42  ;;  %214 = vmatpush.xpose.msra.mxu1 %v206_v41 }
  0xc3   :  { %v205_v45 = vmax.f32 %v180_v43, 0.0 }
  0xc5   :  { %215 = vmatpush.xpose.msra.mxu1 %v205_v45 }
  0xc9   :  { %216 = vmatpush.xpose.msra.mxu1 %v204_v47 }
  0xcd   :  { %217 = vmatpush.xpose.msra.mxu1 %v203_v50 }
  0xd1   :  { %218 = vmatpush.xpose.msra.mxu1 %v202_v52 }
  0xd5   :  { %219 = vmatpush.xpose.msra.mxu1 %v201_v55 }
  0xd9   :  { %220 = vmatpush.xpose.msra.mxu1 %v200_v57 }
  0xdd   :  { %221 = vmatpush.xpose.msra.mxu1 %v199_v58 }
  0xe1   :  { %222 = vmatpush.xpose.msra.mxu1 %v198_v61 }
  0xe5   :  { %223 = vmatpush.xpose.msra.mxu1 %v197_v63 }
  0xe9   :  { %224 = vmatpush.xpose.msra.mxu1 %v196_v1 }
  0xed   :  { %225 = vmatpush.xpose.msra.mxu1 %v195_v3 }
  0xf1   :  { %226 = vmatpush.xpose.msra.mxu1 %v194_v4 }
  0xf4   :  { %227 = vmatmul.f32.vlgmr.msra.gmra.mxu1 %v59_v5 }
 0x171   :  { %v228_v7 = vpop.f32.mrf.mxu1 }
 0x172   :  { %v229_v8 = vadd.f32 %v228_v7, %v210_v6 }
 0x174   :  { %v285_v9 = vmul.f32 -1.442695, %v229_v8 }
 0x176   :  { %300 = vpow2.f32 %v285_v9 }
 0x17c   :  { %v301_v10 = vpop.eup %300 }
 0x17d   :  { %v234_v11 = vadd.f32 1.0, %v301_v10 }
 0x17f   :  { %302 = vrcp.f32 %v234_v11  ;;  %v246_v15 = vand.u32 2147483648, %v234_v11  ;;  %v244_v17 = vand.u32 2147483647, %v234_v11  ;;  %vm240_vm2 = vweird.f32 %v234_v11 }
 0x181   :  { %v247_v19 = vor.u32 1.1754944e-38, %v246_v15  ;;  %vm245_vm4 = vcmp.eq.f32.partialorder %v244_v17, 8.507059e+37 }
 0x185   :  { %v303_v12 = vpop.eup %302 }
 0x186   :  { %v236_v13 = vmul.f32 %v303_v12, %v234_v11  ;;  %vm241_vm1 = vweird.f32 %v303_v12 }
 0x187   :  { %vm242_vm3 = vmor %vm240_vm2, %vm241_vm1 }
 0x188   :  { %v237_v14 = vsub.f32 1.0, %v236_v13 }
 0x18a   :  { %v238_v16 = vmul.f32 %v303_v12, %v237_v14 }
 0x18c   :  { %v239_v18 = vadd.f32 %v303_v12, %v238_v16 }
 0x18e   :  { %v243_v20 = vsel %vm242_vm3, %v303_v12, %v239_v18 }
 0x18f   :  { %v248_v21 = vsel %vm245_vm4, %v247_v19, %v243_v20 }
 0x190   :  { %250 = vst [vmem:[#allocation8] sm:$0x1] %v248_v21 }
 0x191   :  { %261 = dma.vmem_to_hbm [thread:$0]  %s257_s8, 16, %s259_s4, [#allocation5]  }
 0x192   :  { %380 = dma.done.wait [#allocation5], 16  }
 0x193   :  { %381 = vsyncadd [#allocation5], 4294967280 }
 0x194   :  { %266 = vsyncpa [#allocation4], 1 }
 0x195   :  { %267 = vsyncpa [#allocation7], 1 }
 0x196   :  { %268 = vsyncpa [#allocation5], 1 }

</bundles_post_ra>
